<compile_context>
chip_gen: v6e
topology: v6e:2x2x1
jax: 0.10.0
libtpu: 0.0.40
codegen_flags: <defaults>
</compile_context>

<pallas_src>
import functools

import jax
import jax.numpy as jnp
from jax.experimental import pallas as pl
from jax.experimental.pallas import tpu as pltpu

NUM_CLASSES = 4

CONV_K = 7
CONV_S = 2
POOL_K = 3
POOL_S = 2
C_IN = 3
C1_OUT = 96

KKC = CONV_K * CONV_K * C_IN        # 147 real contraction depth (NOT padded in HBM)
C_PAD = 128                         # lane-padded channel width
N_TAPS = POOL_K * POOL_K            # 9 pooling taps
IMG_PER_CHUNK = 8                   # images per grid step (keeps rows 8-aligned)


# ----------------------------------------------------------------------------
# Fused kernel, one grid step = (image chunk, pooling tap):
#   conv1 GEMM + bias + ReLU  ->  running max-pool accumulate
#   at the last tap: 1x1-conv GEMM + bias + ReLU  ->  per-image mean  -> out
# ----------------------------------------------------------------------------
def _fused_kernel(patches_ref, w1_ref, b1_ref, w2_ref, b2_ref, out_ref, max_acc,
                  *, n_taps, img_per_chunk, pix_per_img):
    tap = pl.program_id(1)

    # conv1 as im2col GEMM (bf16 operands, f32 accumulate) + bias + ReLU.
    conv = jnp.dot(patches_ref[0], w1_ref[...],
                   preferred_element_type=jnp.float32)
    conv = jnp.maximum(conv + b1_ref[...], 0.0)

    # MaxPool2d(3, 2): running elementwise max over the tap (reduction) axis.
    @pl.when(tap == 0)
    def _():
        max_acc[...] = conv

    @pl.when(tap > 0)
    def _():
        max_acc[...] = jnp.maximum(max_acc[...], conv)

    # Classifier + AdaptiveAvgPool2d((1,1)) only on the final tap.
    @pl.when(tap == n_taps - 1)
    def _():
        pooled = max_acc[...].astype(w2_ref.dtype)
        z = jnp.dot(pooled, w2_ref[...], preferred_element_type=jnp.float32)
        z = jnp.maximum(z + b2_ref[...], 0.0)

        # Segmented per-image mean over contiguous pix_per_img row blocks,
        # expressed as a tiny in-kernel (img, rows) x (rows, C) matmul.
        rows = img_per_chunk * pix_per_img
        j = jax.lax.broadcasted_iota(jnp.int32, (img_per_chunk, rows), 1)
        i = jax.lax.broadcasted_iota(jnp.int32, (img_per_chunk, rows), 0)
        seg = (j >= i * pix_per_img) & (j < (i + 1) * pix_per_img)
        pool_mat = jnp.where(seg, 1.0 / pix_per_img, 0.0).astype(jnp.float32)
        out_ref[...] = jnp.dot(pool_mat, z, preferred_element_type=jnp.float32)


# ----------------------------------------------------------------------------
# One-time parameter preprocessing (hoisted out of the forward path)
# ----------------------------------------------------------------------------
def prepare_params(w1, b1, w2, b2, num_classes=NUM_CLASSES):
    # w1: (96, 3, 7, 7) OIHW -> (kh, kw, cin, cout) -> (147, 96) -> pad cols to 128.
    w1_mat = jnp.transpose(w1, (2, 3, 1, 0)).reshape(KKC, C1_OUT)
    w1_p = jnp.zeros((KKC, C_PAD), jnp.float32).at[:, :C1_OUT].set(w1_mat)
    b1_p = jnp.zeros((1, C_PAD), jnp.float32).at[0, :C1_OUT].set(b1)
    # w2: (K, 96, 1, 1) -> (96, K) -> pad to (128, 128).
    w2_mat = w2.reshape(num_classes, C1_OUT).T
    w2_p = jnp.zeros((C_PAD, C_PAD), jnp.float32).at[:C1_OUT, :num_classes].set(w2_mat)
    b2_p = jnp.zeros((1, C_PAD), jnp.float32).at[0, :num_classes].set(b2)
    # bf16 MXU operands; biases stay f32 (added after f32 accumulation).
    return (w1_p.astype(jnp.bfloat16), b1_p,
            w2_p.astype(jnp.bfloat16), b2_p)


# ----------------------------------------------------------------------------
# Plain-JAX glue (jitted together with the kernel call)
# ----------------------------------------------------------------------------
def _build_tap_patches(x_nhwc, img_per_chunk):
    """im2col grouped by max-pool tap: (n_taps, N_pad*Hp*Wp, 147) bf16."""
    N, H, W, C = x_nhwc.shape
    Ho = (H - CONV_K) // CONV_S + 1
    Wo = (W - CONV_K) // CONV_S + 1
    Hp = (Ho - POOL_K) // POOL_S + 1
    Wp = (Wo - POOL_K) // POOL_S + 1

    # Standard im2col, column order (kh, kw, cin) to match w1_p's row order.
    cols = []
    for i in range(CONV_K):
        for j in range(CONV_K):
            cols.append(x_nhwc[:, i:i + CONV_S * (Ho - 1) + 1:CONV_S,
                                  j:j + CONV_S * (Wo - 1) + 1:CONV_S, :])
    p = jnp.stack(cols, axis=-2).reshape(N, Ho, Wo, KKC)

    # Pad batch to a multiple of img_per_chunk (padded images produce junk
    # that is sliced away in the wrapper).
    N_pad = ((N + img_per_chunk - 1) // img_per_chunk) * img_per_chunk
    if N_pad != N:
        p = jnp.pad(p, ((0, N_pad - N), (0, 0), (0, 0), (0, 0)))

    # Regroup conv positions by pooling tap (di, dj): tap t holds, for every
    # pooling window (hp, wp), the conv position (2*hp+di, 2*wp+dj).
    taps = []
    for di in range(POOL_K):
        for dj in range(POOL_K):
            taps.append(p[:, di:di + POOL_S * (Hp - 1) + 1:POOL_S,
                             dj:dj + POOL_S * (Wp - 1) + 1:POOL_S, :])
    t = jnp.stack(taps, axis=0)                          # (9, N_pad, Hp, Wp, 147)
    patches = t.reshape(N_TAPS, N_pad * Hp * Wp, KKC).astype(jnp.bfloat16)
    return patches, N_pad, Hp * Wp


@functools.partial(jax.jit, static_argnames=("num_classes",))
def modified_squeezenet_forward(x_nchw, prepared_params, num_classes=NUM_CLASSES):
    w1_p, b1_p, w2_p, b2_p = prepared_params
    N = x_nchw.shape[0]
    x = jnp.transpose(x_nchw, (0, 2, 3, 1))              # NCHW -> NHWC

    patches, N_pad, pix_per_img = _build_tap_patches(x, IMG_PER_CHUNK)
    n_chunks = N_pad // IMG_PER_CHUNK
    row_tile = IMG_PER_CHUNK * pix_per_img               # multiple of 8 by construction
    R_pad = N_pad * pix_per_img

    kern = functools.partial(_fused_kernel, n_taps=N_TAPS,
                             img_per_chunk=IMG_PER_CHUNK,
                             pix_per_img=pix_per_img)

    flops = int(2 * N_TAPS * R_pad * KKC * C_PAD          # conv GEMMs
                + 2 * R_pad * C_PAD * C_PAD                # classifier GEMM
                + 2 * IMG_PER_CHUNK * R_pad * C_PAD)       # avg-pool matmul
    bytes_accessed = int(patches.size * patches.dtype.itemsize
                         + w1_p.size * w1_p.dtype.itemsize
                         + w2_p.size * w2_p.dtype.itemsize
                         + b1_p.size * 4 + b2_p.size * 4
                         + N_pad * C_PAD * 4)

    out_p = pl.pallas_call(
        kern,
        out_shape=jax.ShapeDtypeStruct((N_pad, C_PAD), jnp.float32),
        grid=(n_chunks, N_TAPS),
        in_specs=[
            # one tap-block of one image chunk per step (streamed / pipelined)
            pl.BlockSpec((1, row_tile, KKC), lambda r, t: (t, r, 0)),
            pl.BlockSpec((KKC, C_PAD), lambda r, t: (0, 0)),
            pl.BlockSpec((1, C_PAD), lambda r, t: (0, 0)),
            pl.BlockSpec((C_PAD, C_PAD), lambda r, t: (0, 0)),
            pl.BlockSpec((1, C_PAD), lambda r, t: (0, 0)),
        ],
        out_specs=pl.BlockSpec((IMG_PER_CHUNK, C_PAD), lambda r, t: (r, 0)),
        scratch_shapes=[pltpu.VMEM((row_tile, C_PAD), jnp.float32)],
        compiler_params=pltpu.CompilerParams(
            dimension_semantics=("parallel", "arbitrary"),
            vmem_limit_bytes=32 * 1024 * 1024),
        cost_estimate=pl.CostEstimate(flops=flops, transcendentals=0,
                                      bytes_accessed=bytes_accessed),
    )(patches, w1_p, b1_p, w2_p, b2_p)

    # Slice away channel / batch padding (== torch.flatten(x, 1)).
    return out_p[:N, :num_classes]


# ----------------------------------------------------------------------------
# Pure-JAX fp32 reference (verification only)
# ----------------------------------------------------------------------------
def reference_forward(x, params):
    w1, b1, w2, b2 = params
    hi = jax.lax.Precision.HIGHEST
    y = jax.lax.conv_general_dilated(
        x, w1, (2, 2), 'VALID', dimension_numbers=('NCHW', 'OIHW', 'NCHW'),
        precision=hi)
    y = jnp.maximum(y + b1[None, :, None, None], 0.0)
    y = jax.lax.reduce_window(
        y, -jnp.inf, jax.lax.max, (1, 1, 3, 3), (1, 1, 2, 2), 'VALID')
    z = jax.lax.conv_general_dilated(
        y, w2, (1, 1), 'VALID', dimension_numbers=('NCHW', 'OIHW', 'NCHW'),
        precision=hi)
    z = jnp.maximum(z + b2[None, :, None, None], 0.0)
    return jnp.mean(z, axis=(2, 3))


if __name__ == "__main__":
    key = jax.random.PRNGKey(0)
    k1, k2, k3, k4, kx = jax.random.split(key, 5)

    # Deterministic synthetic parameters (PyTorch layouts: OIHW / (Cout,))
    w1 = jax.random.normal(k1, (96, 3, 7, 7), jnp.float32) * 0.05
    b1 = jax.random.normal(k2, (96,), jnp.float32) * 0.05
    w2 = jax.random.normal(k3, (NUM_CLASSES, 96, 1, 1), jnp.float32) * 0.05
    b2 = jax.random.normal(k4, (NUM_CLASSES,), jnp.float32) * 0.05

    prepared = prepare_params(w1, b1, w2, b2)

    # Small input consistent with the module (NCHW, 3 channels):
    # 31x31 -> conv7/s2 -> 13x13 -> maxpool3/s2 -> 6x6 -> head -> (N, num_classes)
    x = jax.random.normal(kx, (2, 3, 31, 31), jnp.float32)

    out = modified_squeezenet_forward(x, prepared)
    out = jax.block_until_ready(out)

    ref = reference_forward(x, (w1, b1, w2, b2))
    assert out.shape == (2, NUM_CLASSES), out.shape
    # bf16 MXU operands with f32 accumulation -> slightly looser tolerance than fp32.
    assert jnp.allclose(out, ref, rtol=2e-2, atol=2e-2), (out, ref)

    print("KERNEL_OK")
</pallas_src>

<mosaic_0001>
module attributes {stable_mosaic.version = 11 : i64} {
  func.func @_fused_kernel(%arg0: i32, %arg1: i32, %arg2: memref<1x288x147xbf16, #tpu.memory_space<vmem>>, %arg3: memref<147x128xbf16, #tpu.memory_space<vmem>>, %arg4: memref<1x128xf32, #tpu.memory_space<vmem>>, %arg5: memref<128x128xbf16, #tpu.memory_space<vmem>>, %arg6: memref<1x128xf32, #tpu.memory_space<vmem>>, %arg7: memref<8x128xf32, #tpu.memory_space<vmem>>, %arg8: memref<288x128xf32, #tpu.memory_space<vmem>>) attributes {dimension_semantics = [#tpu.dimension_semantics<parallel>, #tpu.dimension_semantics<arbitrary>], iteration_bounds = array<i64: 1, 9>, scalar_prefetch = 0 : i64, scratch_operands = 1 : i64, tpu.core_type = #tpu.core_type<tc>, window_params = [{transform_indices = @transform_0, window_bounds = array<i64: 1, 288, 147>}, {pipeline_mode = #tpu.pipeline_mode<synchronous>, transform_indices = @transform_1, window_bounds = array<i64: 147, 128>}, {pipeline_mode = #tpu.pipeline_mode<synchronous>, transform_indices = @transform_2, window_bounds = array<i64: 1, 128>}, {pipeline_mode = #tpu.pipeline_mode<synchronous>, transform_indices = @transform_3, window_bounds = array<i64: 128, 128>}, {pipeline_mode = #tpu.pipeline_mode<synchronous>, transform_indices = @transform_4, window_bounds = array<i64: 1, 128>}, {transform_indices = @transform_5, window_bounds = array<i64: 8, 128>}]} {
    %c0 = arith.constant 0 : index
    %c0_0 = arith.constant 0 : index
    %c0_1 = arith.constant 0 : index
    %0 = vector.load %arg2[%c0, %c0_0, %c0_1] : memref<1x288x147xbf16, #tpu.memory_space<vmem>>, vector<1x288x147xbf16>
    %1 = vector.shape_cast %0 : vector<1x288x147xbf16> to vector<288x147xbf16>
    %c0_2 = arith.constant 0 : index
    %c0_3 = arith.constant 0 : index
    %2 = vector.load %arg3[%c0_2, %c0_3] : memref<147x128xbf16, #tpu.memory_space<vmem>>, vector<147x128xbf16>
    %cst = arith.constant dense<0.000000e+00> : vector<288x128xf32>
    %3 = tpu.matmul %1, %2, %cst {dimension_numbers = #tpu.dot_dimension_numbers<[1], [0], [0], [1], [0, 0, 1, 1], [], []>} : vector<288x147xbf16>, vector<147x128xbf16>, vector<288x128xf32> -> vector<288x128xf32>
    %c0_4 = arith.constant 0 : index
    %c0_5 = arith.constant 0 : index
    %4 = vector.load %arg4[%c0_4, %c0_5] : memref<1x128xf32, #tpu.memory_space<vmem>>, vector<1x128xf32>
    %5 = vector.broadcast %4 : vector<1x128xf32> to vector<288x128xf32>
    %6 = arith.addf %3, %5 : vector<288x128xf32>
    %cst_6 = arith.constant 0.000000e+00 : f32
    %7 = vector.broadcast %cst_6 : f32 to vector<288x128xf32>
    %8 = arith.maximumf %6, %7 : vector<288x128xf32>
    %c0_i32 = arith.constant 0 : i32
    %9 = arith.cmpi eq, %arg1, %c0_i32 : i32
    %10 = arith.extui %9 : i1 to i32
    %c0_i32_7 = arith.constant 0 : i32
    %11 = arith.cmpi ne, %10, %c0_i32_7 : i32
    scf.if %11 {
      %c0_11 = arith.constant 0 : index
      %c0_12 = arith.constant 0 : index
      %18 = vector.load %arg8[%c0_11, %c0_12] : memref<288x128xf32, #tpu.memory_space<vmem>>, vector<288x128xf32>
      tpu.vector_store %arg8[%c0_11, %c0_12], %8 {strides = array<i32>} : memref<288x128xf32, #tpu.memory_space<vmem>>, vector<288x128xf32>,
    } else {
    }
    %c0_i32_8 = arith.constant 0 : i32
    %12 = arith.cmpi sgt, %arg1, %c0_i32_8 : i32
    %13 = arith.extui %12 : i1 to i32
    %c0_i32_9 = arith.constant 0 : i32
    %14 = arith.cmpi ne, %13, %c0_i32_9 : i32
    scf.if %14 {
      %c0_11 = arith.constant 0 : index
      %c0_12 = arith.constant 0 : index
      %18 = vector.load %arg8[%c0_11, %c0_12] : memref<288x128xf32, #tpu.memory_space<vmem>>, vector<288x128xf32>
      %19 = arith.maximumf %18, %8 : vector<288x128xf32>
      %c0_13 = arith.constant 0 : index
      %c0_14 = arith.constant 0 : index
      %20 = vector.load %arg8[%c0_13, %c0_14] : memref<288x128xf32, #tpu.memory_space<vmem>>, vector<288x128xf32>
      tpu.vector_store %arg8[%c0_13, %c0_14], %19 {strides = array<i32>} : memref<288x128xf32, #tpu.memory_space<vmem>>, vector<288x128xf32>,
    } else {
    }
    %c8_i32 = arith.constant 8 : i32
    %15 = arith.cmpi eq, %arg1, %c8_i32 : i32
    %16 = arith.extui %15 : i1 to i32
    %c0_i32_10 = arith.constant 0 : i32
    %17 = arith.cmpi ne, %16, %c0_i32_10 : i32
    scf.if %17 {
      %c0_11 = arith.constant 0 : index
      %c0_12 = arith.constant 0 : index
      %18 = vector.load %arg8[%c0_11, %c0_12] : memref<288x128xf32, #tpu.memory_space<vmem>>, vector<288x128xf32>
      %19 = arith.truncf %18 : vector<288x128xf32> to vector<288x128xbf16>
      %c0_13 = arith.constant 0 : index
      %c0_14 = arith.constant 0 : index
      %20 = vector.load %arg5[%c0_13, %c0_14] : memref<128x128xbf16, #tpu.memory_space<vmem>>, vector<128x128xbf16>
      %cst_15 = arith.constant dense<0.000000e+00> : vector<288x128xf32>
      %21 = tpu.matmul %19, %20, %cst_15 {dimension_numbers = #tpu.dot_dimension_numbers<[1], [0], [0], [1], [0, 0, 1, 1], [], []>} : vector<288x128xbf16>, vector<128x128xbf16>, vector<288x128xf32> -> vector<288x128xf32>
      %c0_16 = arith.constant 0 : index
      %c0_17 = arith.constant 0 : index
      %22 = vector.load %arg6[%c0_16, %c0_17] : memref<1x128xf32, #tpu.memory_space<vmem>>, vector<1x128xf32>
      %23 = vector.broadcast %22 : vector<1x128xf32> to vector<288x128xf32>
      %24 = arith.addf %21, %23 : vector<288x128xf32>
      %cst_18 = arith.constant 0.000000e+00 : f32
      %25 = vector.broadcast %cst_18 : f32 to vector<288x128xf32>
      %26 = arith.maximumf %24, %25 : vector<288x128xf32>
      %27 = tpu.iota {dimensions = array<i32: 1>} : vector<8x288xi32>
      %28 = tpu.iota {dimensions = array<i32: 0>} : vector<8x288xi32>
      %c36_i32 = arith.constant 36 : i32
      %29 = vector.broadcast %c36_i32 : i32 to vector<8x288xi32>
      %30 = arith.muli %28, %29 : vector<8x288xi32>
      %31 = arith.cmpi sge, %27, %30 : vector<8x288xi32>
      %c1_i32 = arith.constant 1 : i32
      %32 = vector.broadcast %c1_i32 : i32 to vector<8x288xi32>
      %33 = arith.addi %28, %32 : vector<8x288xi32>
      %c36_i32_19 = arith.constant 36 : i32
      %34 = vector.broadcast %c36_i32_19 : i32 to vector<8x288xi32>
      %35 = arith.muli %33, %34 : vector<8x288xi32>
      %36 = arith.cmpi slt, %27, %35 : vector<8x288xi32>
      %37 = arith.andi %31, %36 : vector<8x288xi1>
      %cst_20 = arith.constant 0.027777778 : f32
      %cst_21 = arith.constant 0.000000e+00 : f32
      %38 = vector.broadcast %cst_20 : f32 to vector<8x288xf32>
      %39 = vector.broadcast %cst_21 : f32 to vector<8x288xf32>
      %40 = arith.select %37, %38, %39 : vector<8x288xi1>, vector<8x288xf32>
      %cst_22 = arith.constant dense<0.000000e+00> : vector<8x128xf32>
      %41 = tpu.matmul %40, %26, %cst_22 {dimension_numbers = #tpu.dot_dimension_numbers<[1], [0], [0], [1], [0, 0, 1, 1], [], []>} : vector<8x288xf32>, vector<288x128xf32>, vector<8x128xf32> -> vector<8x128xf32>
      %c0_23 = arith.constant 0 : index
      %c0_24 = arith.constant 0 : index
      %42 = vector.load %arg7[%c0_23, %c0_24] : memref<8x128xf32, #tpu.memory_space<vmem>>, vector<8x128xf32>
      tpu.vector_store %arg7[%c0_23, %c0_24], %41 {strides = array<i32>} : memref<8x128xf32, #tpu.memory_space<vmem>>, vector<8x128xf32>,
    } else {
    }
    return
  }
  func.func @transform_0(%arg0: i32, %arg1: i32) -> (i32, i32, i32) {
    %c0_i32 = arith.constant 0 : i32
    %c0_i32_0 = arith.constant 0 : i32
    return %arg1, %arg0, %c0_i32 : i32, i32, i32
  }
  func.func @transform_1(%arg0: i32, %arg1: i32) -> (i32, i32) {
    %c0_i32 = arith.constant 0 : i32
    %c0_i32_0 = arith.constant 0 : i32
    %c0_i32_1 = arith.constant 0 : i32
    return %c0_i32, %c0_i32_0 : i32, i32
  }
  func.func @transform_2(%arg0: i32, %arg1: i32) -> (i32, i32) {
    %c0_i32 = arith.constant 0 : i32
    %c0_i32_0 = arith.constant 0 : i32
    %c0_i32_1 = arith.constant 0 : i32
    return %c0_i32, %c0_i32_0 : i32, i32
  }
  func.func @transform_3(%arg0: i32, %arg1: i32) -> (i32, i32) {
    %c0_i32 = arith.constant 0 : i32
    %c0_i32_0 = arith.constant 0 : i32
    %c0_i32_1 = arith.constant 0 : i32
    return %c0_i32, %c0_i32_0 : i32, i32
  }
  func.func @transform_4(%arg0: i32, %arg1: i32) -> (i32, i32) {
    %c0_i32 = arith.constant 0 : i32
    %c0_i32_0 = arith.constant 0 : i32
    %c0_i32_1 = arith.constant 0 : i32
    return %c0_i32, %c0_i32_0 : i32, i32
  }
  func.func @transform_5(%arg0: i32, %arg1: i32) -> (i32, i32) {
    %c0_i32 = arith.constant 0 : i32
    %c0_i32_0 = arith.constant 0 : i32
    return %arg0, %c0_i32 : i32, i32
  }
}

</mosaic_0001>

<bundles_post_ra>
// kernel: modified_squeezenet_forward.1
= control target key start
LH: loop header
LB: loop body
LE: loop exit
PB: predicated region body
PF: predicated region fallthrough
CT: control target
= control target key end

     0   :  { %s1937_s18 = smov 0   ;;  %s1939_s19 = smov 0   ;;  %s2474_s0 = inlined_call_operand.vmem [shape: bf16[9,288,147], index: 0, kind: input, shape index: {}]   ;;  %s2475_s1 = inlined_call_operand.vmem [shape: bf16[147,128], index: 1, kind: input, shape index: {}]   ;;  %s2476_s2 = inlined_call_operand.vmem [shape: f32[1,128], index: 2, kind: input, shape index: {}]   ;;  %s2477_s3 = inlined_call_operand.vmem [shape: bf16[128,128], index: 3, kind: input, shape index: {}]   ;;  %s2478_s4 = inlined_call_operand.vmem [shape: f32[1,128], index: 4, kind: input, shape index: {}]   ;;  %s2479_s5 = inlined_call_operand.vmem [shape: f32[8,128], index: 5, kind: output, shape index: {}]  }
   0x1   :  { %s1941_s20 = smov 0  }
   0x2 LB: > { %s24_s21 = sadd.s32 1, %s1896_s19  ;;  %p1542_p0 = scmp.ge.s32.totalorder %s1900_s20, 1  ;;  %s1900_s20 = sphi %s1941_s20, %s15_s20   ;;  %s1896_s19 = sphi %s1939_s19, %s2525_s19   ;;  %s1892_s18 = sphi %s1937_s18, %s2524_s18  }
   0x3   : > { %p25_p1 = scmp.ge.s32.totalorder %s24_s21, 9  ;;  %p207_p2 = scmp.lt.s32.totalorder %s1900_s20, 10 }
   0x5   : > { %s2527_s21 = smov (%p25_p1, %s24_s21), 0  ;;  %p208_p3 = pnand %p1542_p0, %p207_p2 }
   0x6   : > { %p240_p4 = scmp.lt.s32.totalorder (!%p208_p3), %s1892_s18, 8  ;;  %p1609_p5 = scmp.ne.s32.totalorder (!%p208_p3), %s1892_s18, 0 }
   0x7   : > { %211 = sbr.rel (%p208_p3) target bundleno = 896 (0x380), region = 40 }
   0xc   : > { %v1806_v0 = vld [vmem:[%s2475_s1 + $0x38] sm:$0xff]   ;;  %v1902_v1 = vmov 0   ;;  %v1807_v2 = vld [vmem:[%s2475_s1 + $0x30] sm:$0xff]   ;;  %v1808_v3 = vld [vmem:[%s2475_s1 + $0x28] sm:$0xff]   ;;  %s241_s28 = scalar_select %p240_p4, %s1892_s18, 8  ;;  %vm536_vm0 = vcmask 154624  }
   0xd   : > { %598 = vmatprep.subr.bf16.mxu0 %v1902_v1  ;;  %1756 = vmatprep.subr.bf16.mxu1 %v1902_v1  ;;  %v1809_v4 = vld [vmem:[%s2475_s1 + $0x20] sm:$0xff]   ;;  %v1810_v5 = vld [vmem:[%s2475_s1 + $0x18] sm:$0xff]   ;;  %v1811_v8 = vld [vmem:[%s2475_s1 + $0x10] sm:$0xff]   ;;  %vm591_vm1 = vcmask 1040384   ;;  %vm592_vm2 = vcmask 1041408   ;;  %v1903_v10 = vmov 65535  }
   0xe   : > { %599 = vmatpush1.bf16.msra.mxu0 %v1806_v0  ;;  %1766 = vmatpush1.bf16.msra.mxu1 %v1806_v0  ;;  %s1776_s6 = smul.u32 288, %s241_s28  ;;  %v1812_v9 = vld [vmem:[%s2475_s1 + $0x8] sm:$0xff]   ;;  %v593_v11 = vsel %vm591_vm1, 4294967295, %v1903_v10  ;;  %v1813_v12 = vld [vmem:[%s2475_s1] sm:$0xff]  }
   0xf   : > { %600 = vmatprep.subr.bf16.mxu0 %v1902_v1  ;;  %1757 = vmatprep.subr.bf16.mxu1 %v1902_v1  ;;  %v1814_v13 = vld [vmem:[%s2475_s1 + $0x48] ss:$0 sps:$4 sm:$0x33]   ;;  %v594_v14 = vsel %vm592_vm2, %v593_v11, 0  ;;  %v1815_v16 = vld [vmem:[%s2475_s1 + $0x40] sm:$0xff]  }
  0x10   : > { %s1974_s9 = scalar_lea.vmem %s2474_s0, %s1776_s6  ;;  %v596_v15 = vand.u32 %v1814_v13, %v594_v14  ;;  %v2051_v51 = vld [vmem:[%s2476_s2] ss:$0 sm:$0xff] }
  0x11   : > { %v1818_v6 = vld [vmem:[%s1974_s9 + $0x4] ss:$8 sps:$4 sm:$0xff]   ;;  %v1821_v7 = vld [vmem:[%s1974_s9 + $0x94] ss:$8 sps:$4 sm:$0xff]   ;;  %v1816_v17 = vld [vmem:[%s1974_s9] ss:$8 sps:$4 sm:$0xff]  }
  0x12   : > { %601 = vmatpush1.bf16.msra.mxu0 %v1807_v2  ;;  %1767 = vmatpush1.bf16.msra.mxu1 %v1807_v2  ;;  %v1819_v18 = vld [vmem:[%s1974_s9 + $0x90] ss:$8 sps:$4 sm:$0xff]   ;;  %v1822_v19 = vld [vmem:[%s1974_s9 + $0x14] ss:$8 sps:$4 sm:$0xff]   ;;  %v1824_v20 = vld [vmem:[%s1974_s9 + $0xa4] ss:$8 sps:$4 sm:$0xff]  }
  0x13   : > { %602 = vmatprep.subr.bf16.mxu0 %v1902_v1  ;;  %1758 = vmatprep.subr.bf16.mxu1 %v1902_v1  ;;  %v1826_v21 = vld [vmem:[%s1974_s9 + $0x10] ss:$8 sps:$4 sm:$0xff]   ;;  %v1827_v22 = vld [vmem:[%s1974_s9 + $0xa0] ss:$8 sps:$4 sm:$0xff]   ;;  %v1828_v23 = vld [vmem:[%s1974_s9 + $0x24] ss:$8 sps:$4 sm:$0xff]  }
  0x14   : > { %1591 = vmatprep.mubr.msk.bf16.mxu0 %vm536_vm0, %v1818_v6  ;;  %1600 = vmatprep.mubr.msk.bf16.mxu1 %vm536_vm0, %v1821_v7  ;;  %v1830_v24 = vld [vmem:[%s1974_s9 + $0xb4] ss:$8 sps:$4 sm:$0xff]   ;;  %v1832_v25 = vld [vmem:[%s1974_s9 + $0x20] ss:$8 sps:$4 sm:$0xff]   ;;  %v1833_v26 = vld [vmem:[%s1974_s9 + $0xb0] ss:$8 sps:$4 sm:$0xff]  }
  0x15   : > { %v1834_v27 = vld [vmem:[%s1974_s9 + $0x34] ss:$8 sps:$4 sm:$0xff]   ;;  %v1836_v28 = vld [vmem:[%s1974_s9 + $0xc4] ss:$8 sps:$4 sm:$0xff]   ;;  %v1838_v29 = vld [vmem:[%s1974_s9 + $0x30] ss:$8 sps:$4 sm:$0xff]  }
  0x16   : > { %603 = vmatpush1.bf16.msra.mxu0 %v1808_v3  ;;  %1768 = vmatpush1.bf16.msra.mxu1 %v1808_v3  ;;  %v1839_v30 = vld [vmem:[%s1974_s9 + $0xc0] ss:$8 sps:$4 sm:$0xff]   ;;  %v1840_v31 = vld [vmem:[%s1974_s9 + $0x44] ss:$8 sps:$4 sm:$0xff]   ;;  %v1842_v32 = vld [vmem:[%s1974_s9 + $0xd4] ss:$8 sps:$4 sm:$0xff]  }
  0x17   : > { %604 = vmatprep.subr.bf16.mxu0 %v1902_v1  ;;  %1759 = vmatprep.subr.bf16.mxu1 %v1902_v1  ;;  %v1844_v33 = vld [vmem:[%s1974_s9 + $0x40] ss:$8 sps:$4 sm:$0xff]   ;;  %v1845_v34 = vld [vmem:[%s1974_s9 + $0xd0] ss:$8 sps:$4 sm:$0xff]   ;;  %v1846_v35 = vld [vmem:[%s1974_s9 + $0x54] ss:$8 sps:$4 sm:$0xff]  }
  0x18   : > { %v1848_v36 = vld [vmem:[%s1974_s9 + $0xe4] ss:$8 sps:$4 sm:$0xff]   ;;  %v1850_v37 = vld [vmem:[%s1974_s9 + $0x50] ss:$8 sps:$4 sm:$0xff]   ;;  %v1851_v38 = vld [vmem:[%s1974_s9 + $0xe0] ss:$8 sps:$4 sm:$0xff]  }
  0x19   : > { %v1852_v39 = vld [vmem:[%s1974_s9 + $0x64] ss:$8 sps:$4 sm:$0xff]   ;;  %v1854_v40 = vld [vmem:[%s1974_s9 + $0xf4] ss:$8 sps:$4 sm:$0xff]   ;;  %v1856_v41 = vld [vmem:[%s1974_s9 + $0x60] ss:$8 sps:$4 sm:$0xff]  }
  0x1a   : > { %605 = vmatpush1.bf16.msra.mxu0 %v1809_v4  ;;  %1769 = vmatpush1.bf16.msra.mxu1 %v1809_v4  ;;  %v1857_v42 = vld [vmem:[%s1974_s9 + $0xf0] ss:$8 sps:$4 sm:$0xff]   ;;  %v1858_v43 = vld [vmem:[%s1974_s9 + $0x74] ss:$8 sps:$4 sm:$0xff]   ;;  %v1860_v44 = vld [vmem:[%s1974_s9 + $0x104] ss:$8 sps:$4 sm:$0xff]  }
  0x1b   : > { %606 = vmatprep.subr.bf16.mxu0 %v1902_v1  ;;  %1760 = vmatprep.subr.bf16.mxu1 %v1902_v1  ;;  %v1862_v45 = vld [vmem:[%s1974_s9 + $0x70] ss:$8 sps:$4 sm:$0xff]   ;;  %v1863_v46 = vld [vmem:[%s1974_s9 + $0x100] ss:$8 sps:$4 sm:$0xff]   ;;  %v1864_v47 = vld [vmem:[%s1974_s9 + $0x84] ss:$8 sps:$4 sm:$0xff]  }
  0x1c   : > { %v1866_v48 = vld [vmem:[%s1974_s9 + $0x114] ss:$8 sps:$4 sm:$0xff]   ;;  %v1868_v49 = vld [vmem:[%s1974_s9 + $0x80] ss:$8 sps:$4 sm:$0xff]   ;;  %v1869_v50 = vld [vmem:[%s1974_s9 + $0x110] ss:$8 sps:$4 sm:$0xff]  }
  0x1e   : > { %607 = vmatpush1.bf16.msra.mxu0 %v1810_v5  ;;  %1770 = vmatpush1.bf16.msra.mxu1 %v1810_v5 }
  0x1f   : > { %608 = vmatprep.subr.bf16.mxu0 %v1902_v1  ;;  %1761 = vmatprep.subr.bf16.mxu1 %v1902_v1 }
  0x22   : > { %609 = vmatpush1.bf16.msra.mxu0 %v1811_v8  ;;  %1771 = vmatpush1.bf16.msra.mxu1 %v1811_v8 }
  0x23   : > { %610 = vmatprep.subr.bf16.mxu0 %v1902_v1  ;;  %1762 = vmatprep.subr.bf16.mxu1 %v1902_v1 }
  0x26   : > { %611 = vmatpush1.bf16.msra.mxu0 %v1812_v9  ;;  %1772 = vmatpush1.bf16.msra.mxu1 %v1812_v9 }
  0x27   : > { %612 = vmatprep.subr.bf16.mxu0 %v1902_v1  ;;  %1763 = vmatprep.subr.bf16.mxu1 %v1902_v1 }
  0x2a   : > { %613 = vmatpush1.bf16.msra.mxu0 %v1813_v12  ;;  %1773 = vmatpush1.bf16.msra.mxu1 %v1813_v12 }
  0x2b   : > { %626 = vmatprep.subr.bf16.mxu0 %v1902_v1  ;;  %1764 = vmatprep.subr.bf16.mxu1 %v1902_v1 }
  0x2e   : > { %627 = vmatpush2.bf16.msra.mxu0 %v596_v15  ;;  %1774 = vmatpush2.bf16.msra.mxu1 %v596_v15 }
  0x2f   : > { %628 = vmatprep.subr.bf16.mxu0 %v1902_v1  ;;  %1765 = vmatprep.subr.bf16.mxu1 %v1902_v1 }
  0x32   : > { %629 = vmatpush2.bf16.msra.mxu0 %v1815_v16  ;;  %1775 = vmatpush2.bf16.msra.mxu1 %v1815_v16 }
  0x35   : > { %631 = vmatmul.mubr.bf16.vlgmr.msra.gmra.mxu0 %v1816_v17  ;;  %703 = vmatmul.mubr.bf16.vlgmr.msra.gmra.mxu1 %v1819_v18 }
  0x36   : > { %1592 = vmatprep.mubr.msk.bf16.mxu0 %vm536_vm0, %v1822_v19  ;;  %1601 = vmatprep.mubr.msk.bf16.mxu1 %vm536_vm0, %v1824_v20 }
  0x3d   : > { %639 = vmatmul.mubr.bf16.gmra.mxu0 %v1826_v21  ;;  %711 = vmatmul.mubr.bf16.gmra.mxu1 %v1827_v22 }
  0x3e   : > { %1593 = vmatprep.mubr.msk.bf16.mxu0 %vm536_vm0, %v1828_v23  ;;  %1602 = vmatprep.mubr.msk.bf16.mxu1 %vm536_vm0, %v1830_v24 }
  0x45   : > { %647 = vmatmul.mubr.bf16.gmra.mxu0 %v1832_v25  ;;  %719 = vmatmul.mubr.bf16.gmra.mxu1 %v1833_v26 }
  0x46   : > { %1594 = vmatprep.mubr.msk.bf16.mxu0 %vm536_vm0, %v1834_v27  ;;  %1603 = vmatprep.mubr.msk.bf16.mxu1 %vm536_vm0, %v1836_v28 }
  0x4d   : > { %655 = vmatmul.mubr.bf16.gmra.mxu0 %v1838_v29  ;;  %727 = vmatmul.mubr.bf16.gmra.mxu1 %v1839_v30 }
  0x4e   : > { %1595 = vmatprep.mubr.msk.bf16.mxu0 %vm536_vm0, %v1840_v31  ;;  %1604 = vmatprep.mubr.msk.bf16.mxu1 %vm536_vm0, %v1842_v32 }
  0x55   : > { %663 = vmatmul.mubr.bf16.gmra.mxu0 %v1844_v33  ;;  %735 = vmatmul.mubr.bf16.gmra.mxu1 %v1845_v34 }
  0x56   : > { %1596 = vmatprep.mubr.msk.bf16.mxu0 %vm536_vm0, %v1846_v35  ;;  %1605 = vmatprep.mubr.msk.bf16.mxu1 %vm536_vm0, %v1848_v36 }
  0x5d   : > { %671 = vmatmul.mubr.bf16.gmra.mxu0 %v1850_v37  ;;  %743 = vmatmul.mubr.bf16.gmra.mxu1 %v1851_v38 }
  0x5e   : > { %1597 = vmatprep.mubr.msk.bf16.mxu0 %vm536_vm0, %v1852_v39  ;;  %1606 = vmatprep.mubr.msk.bf16.mxu1 %vm536_vm0, %v1854_v40 }
  0x65   : > { %679 = vmatmul.mubr.bf16.gmra.mxu0 %v1856_v41  ;;  %751 = vmatmul.mubr.bf16.gmra.mxu1 %v1857_v42 }
  0x66   : > { %1598 = vmatprep.mubr.msk.bf16.mxu0 %vm536_vm0, %v1858_v43  ;;  %1607 = vmatprep.mubr.msk.bf16.mxu1 %vm536_vm0, %v1860_v44 }
  0x6d   : > { %687 = vmatmul.mubr.bf16.gmra.mxu0 %v1862_v45  ;;  %759 = vmatmul.mubr.bf16.gmra.mxu1 %v1863_v46 }
  0x6e   : > { %1599 = vmatprep.mubr.msk.bf16.mxu0 %vm536_vm0, %v1864_v47  ;;  %1608 = vmatprep.mubr.msk.bf16.mxu1 %vm536_vm0, %v1866_v48 }
  0x75   : > { %695 = vmatmul.mubr.bf16.gmra.mxu0 %v1868_v49  ;;  %767 = vmatmul.mubr.bf16.gmra.mxu1 %v1869_v50 }
  0xf5   : > { %v632_v52 = vpop.f32.mrf.mxu0  ;;  %v704_v53 = vpop.f32.mrf.mxu1 }
  0xf6   : > { %v2054_v54 = vadd.f32 %v2051_v51, %v632_v52  ;;  %v2057_v55 = vadd.f32 %v2051_v51, %v704_v53 }
  0xf7   : > { %v634_v56 = vpop.f32.mrf.mxu0  ;;  %v706_v57 = vpop.f32.mrf.mxu1 }
  0xf8   : > { %v775_v58 = vmax.f32 %v2054_v54, 0.0  ;;  %v2481_v59 = vmax.f32 %v2057_v55, 0.0 }
  0xf9   : > { %v635_v60 = vpop.f32.mrf.mxu0  ;;  %v707_v61 = vpop.f32.mrf.mxu1 }
  0xfa   : > { %v2062_v62 = vadd.f32 %v2051_v51, %v635_v60  ;;  %v2065_v63 = vadd.f32 %v2051_v51, %v707_v61 }
  0xfb   : > { %v637_v0 = vpop.f32.mrf.mxu0  ;;  %v709_v1 = vpop.f32.mrf.mxu1 }
  0xfc   : > { %v776_v2 = vmax.f32 %v2062_v62, 0.0 }
  0xfd   : > { %v640_v4 = vpop.f32.mrf.mxu0  ;;  %v712_v5 = vpop.f32.mrf.mxu1 }
  0xfe   : > { %v2070_v6 = vadd.f32 %v2051_v51, %v640_v4  ;;  %v2073_v7 = vadd.f32 %v2051_v51, %v712_v5 }
  0xff   : > { %v642_v8 = vpop.f32.mrf.mxu0  ;;  %v714_v9 = vpop.f32.mrf.mxu1 }
 0x100   : > { %v777_v10 = vmax.f32 %v2070_v6, 0.0 }
 0x101   : > { %v643_v12 = vpop.f32.mrf.mxu0  ;;  %v715_v13 = vpop.f32.mrf.mxu1 }
 0x102   : > { %v2078_v14 = vadd.f32 %v2051_v51, %v643_v12  ;;  %v2081_v15 = vadd.f32 %v2051_v51, %v715_v13 }
 0x103   : > { %v645_v16 = vpop.f32.mrf.mxu0  ;;  %v717_v17 = vpop.f32.mrf.mxu1 }
 0x104   : > { %v778_v18 = vmax.f32 %v2078_v14, 0.0 }
 0x105   : > { %v648_v20 = vpop.f32.mrf.mxu0  ;;  %v720_v21 = vpop.f32.mrf.mxu1 }
 0x106   : > { %v2086_v22 = vadd.f32 %v2051_v51, %v648_v20  ;;  %v2089_v23 = vadd.f32 %v2051_v51, %v720_v21 }
 0x107   : > { %v650_v24 = vpop.f32.mrf.mxu0  ;;  %v722_v25 = vpop.f32.mrf.mxu1 }
 0x108   : > { %v779_v26 = vmax.f32 %v2086_v22, 0.0 }
 0x109   : > { %v651_v28 = vpop.f32.mrf.mxu0  ;;  %v723_v29 = vpop.f32.mrf.mxu1 }
 0x10a   : > { %v2094_v30 = vadd.f32 %v2051_v51, %v651_v28  ;;  %v2097_v31 = vadd.f32 %v2051_v51, %v723_v29 }
 0x10b   : > { %v653_v32 = vpop.f32.mrf.mxu0  ;;  %v725_v33 = vpop.f32.mrf.mxu1 }
 0x10c   : > { %v780_v34 = vmax.f32 %v2094_v30, 0.0 }
 0x10d   : > { %v656_v36 = vpop.f32.mrf.mxu0  ;;  %v728_v37 = vpop.f32.mrf.mxu1 }
 0x10e   : > { %v2102_v38 = vadd.f32 %v2051_v51, %v656_v36  ;;  %v2105_v39 = vadd.f32 %v2051_v51, %v728_v37 }
 0x10f   : > { %v658_v40 = vpop.f32.mrf.mxu0  ;;  %v730_v41 = vpop.f32.mrf.mxu1 }
 0x110   : > { %v781_v42 = vmax.f32 %v2102_v38, 0.0 }
 0x111   : > { %v659_v44 = vpop.f32.mrf.mxu0  ;;  %v731_v45 = vpop.f32.mrf.mxu1 }
 0x112   : > { %v2110_v46 = vadd.f32 %v2051_v51, %v659_v44  ;;  %v2113_v47 = vadd.f32 %v2051_v51, %v731_v45 }
 0x113   : > { %v661_v48 = vpop.f32.mrf.mxu0  ;;  %v733_v49 = vpop.f32.mrf.mxu1 }
 0x114   : > { %v782_v50 = vmax.f32 %v2110_v46, 0.0 }
 0x115   : > { %v664_v53 = vpop.f32.mrf.mxu0  ;;  %v736_v56 = vpop.f32.mrf.mxu1 }
 0x116   : > { %v2118_v57 = vadd.f32 %v2051_v51, %v664_v53  ;;  %v2121_v60 = vadd.f32 %v2051_v51, %v736_v56 }
 0x117   : > { %v666_v61 = vpop.f32.mrf.mxu0  ;;  %v738_v0 = vpop.f32.mrf.mxu1 }
 0x118   : > { %v783_v1 = vmax.f32 %v2118_v57, 0.0 }
 0x119   : > { %v667_v5 = vpop.f32.mrf.mxu0  ;;  %v739_v8 = vpop.f32.mrf.mxu1 }
 0x11a   : > { %v2126_v9 = vadd.f32 %v2051_v51, %v667_v5  ;;  %v2129_v12 = vadd.f32 %v2051_v51, %v739_v8 }
 0x11b   : > { %v669_v13 = vpop.f32.mrf.mxu0  ;;  %v741_v16 = vpop.f32.mrf.mxu1 }
 0x11c   : > { %v784_v17 = vmax.f32 %v2126_v9, 0.0 }
 0x11d   : > { %v672_v21 = vpop.f32.mrf.mxu0  ;;  %v744_v24 = vpop.f32.mrf.mxu1 }
 0x11e   : > { %v2134_v25 = vadd.f32 %v2051_v51, %v672_v21  ;;  %v2137_v28 = vadd.f32 %v2051_v51, %v744_v24 }
 0x11f   : > { %v674_v29 = vpop.f32.mrf.mxu0  ;;  %v746_v32 = vpop.f32.mrf.mxu1 }
 0x120   : > { %v785_v33 = vmax.f32 %v2134_v25, 0.0 }
 0x121   : > { %v675_v37 = vpop.f32.mrf.mxu0  ;;  %v747_v40 = vpop.f32.mrf.mxu1 }
 0x122   : > { %v2142_v41 = vadd.f32 %v2051_v51, %v675_v37  ;;  %v2145_v44 = vadd.f32 %v2051_v51, %v747_v40 }
 0x123   : > { %v677_v45 = vpop.f32.mrf.mxu0  ;;  %v749_v48 = vpop.f32.mrf.mxu1 }
 0x124   : > { %v786_v49 = vmax.f32 %v2142_v41, 0.0 }
 0x125   : > { %v680_v56 = vpop.f32.mrf.mxu0  ;;  %v752_v61 = vpop.f32.mrf.mxu1 }
 0x126   : > { %v2150_v0 = vadd.f32 %v2051_v51, %v680_v56  ;;  %v2153_v5 = vadd.f32 %v2051_v51, %v752_v61 }
 0x127   : > { %v682_v8 = vpop.f32.mrf.mxu0  ;;  %v754_v13 = vpop.f32.mrf.mxu1 }
 0x128   : > { %v787_v16 = vmax.f32 %v2150_v0, 0.0 }
 0x129   : > { %v683_v24 = vpop.f32.mrf.mxu0  ;;  %v755_v29 = vpop.f32.mrf.mxu1 }
 0x12a   : > { %v2158_v32 = vadd.f32 %v2051_v51, %v683_v24  ;;  %v2161_v37 = vadd.f32 %v2051_v51, %v755_v29 }
 0x12b   : > { %v685_v40 = vpop.f32.mrf.mxu0  ;;  %v757_v45 = vpop.f32.mrf.mxu1 }
 0x12c   : > { %v788_v48 = vmax.f32 %v2158_v32, 0.0 }
 0x12d   : > { %v688_v61 = vpop.f32.mrf.mxu0  ;;  %v760_v8 = vpop.f32.mrf.mxu1 }
 0x12e   : > { %v2166_v13 = vadd.f32 %v2051_v51, %v688_v61  ;;  %v2169_v21 = vadd.f32 %v2051_v51, %v760_v8 }
 0x12f   : > { %v690_v53 = vpop.f32.mrf.mxu0  ;;  %v762_v24 = vpop.f32.mrf.mxu1 }
 0x130   : > { %v789_v36 = vmax.f32 %v2166_v13, 0.0 }
 0x131   : > { %v691_v40 = vpop.f32.mrf.mxu0  ;;  %v763_v45 = vpop.f32.mrf.mxu1 }
 0x132   : > { %v2174_v20 = vadd.f32 %v2051_v51, %v691_v40  ;;  %v2177_v56 = vadd.f32 %v2051_v51, %v763_v45 }
 0x133   : > { %v693_v4 = vpop.f32.mrf.mxu0  ;;  %v765_v61 = vpop.f32.mrf.mxu1 }
 0x134   : > { %v790_v52 = vmax.f32 %v2174_v20, 0.0 }
 0x135   : > { %v696_v53 = vpop.f32.mrf.mxu0  ;;  %v768_v24 = vpop.f32.mrf.mxu1 }
 0x136   : > { %v2182_v43 = vadd.f32 %v2051_v51, %v696_v53  ;;  %v2185_v29 = vadd.f32 %v2051_v51, %v768_v24 }
 0x137   : > { %v698_v35 = vpop.f32.mrf.mxu0  ;;  %v770_v40 = vpop.f32.mrf.mxu1 }
 0x138   : > { %v2484_v27 = vmax.f32 %v2182_v43, 0.0  ;;  %v2480_v45 = vmax.f32 %v2185_v29, 0.0  ;;  %814 = sbr.rel (%p1609_p5) target bundleno = 335 (0x14f), region = 44 }
 0x139   : > { %v699_v4 = vpop.f32.mrf.mxu0  ;;  %v771_v61 = vpop.f32.mrf.mxu1 }
 0x13a   : > { %v2190_v19 = vadd.f32 %v2051_v51, %v699_v4  ;;  %v2193_v8 = vadd.f32 %v2051_v51, %v771_v61 }
 0x13b   : > { %v701_v11 = vpop.f32.mrf.mxu0  ;;  %v773_v53 = vpop.f32.mrf.mxu1 }
 0x13c   : > { %v2483_v3 = vmax.f32 %v2190_v19, 0.0  ;;  %v2482_v24 = vmax.f32 %v2193_v8, 0.0 }
 0x13d   : > { %815 = vst [vmem:[#allocation2 + $0xb0] sm:$0xff] %v775_v58  ;;  %816 = vst [vmem:[#allocation2 + $0xd0] sm:$0xff] %v776_v2  ;;  %v2485_v51 = vmax.f32 %v2065_v63, 0.0  ;;  %v2486_v11 = vmax.f32 %v2073_v7, 0.0  ;;  %v2487_v35 = vmax.f32 %v2081_v15, 0.0  ;;  %v2488_v40 = vmax.f32 %v2089_v23, 0.0 }
 0x13e   : > { %817 = vst [vmem:[#allocation2 + $0x10] sm:$0xff] %v777_v10  ;;  %818 = vst [vmem:[#allocation2 + $0x48] sm:$0xff] %v778_v18  ;;  %v2489_v4 = vmax.f32 %v2097_v31, 0.0  ;;  %v2490_v61 = vmax.f32 %v2105_v39, 0.0  ;;  %v2491_v53 = vmax.f32 %v2113_v47, 0.0 }
 0x13f   : > { %819 = vst [vmem:[#allocation2 + $0x108] sm:$0xff] %v779_v26  ;;  %820 = vst [vmem:[#allocation2 + $0x68] sm:$0xff] %v780_v34 }
 0x140   : > { %821 = vst [vmem:[#allocation2 + $0x30] sm:$0xff] %v781_v42  ;;  %822 = vst [vmem:[#allocation2 + $0x18] sm:$0xff] %v782_v50 }
 0x141   : > { %823 = vst [vmem:[#allocation2 + $0x80] sm:$0xff] %v783_v1  ;;  %824 = vst [vmem:[#allocation2 + $0x110] sm:$0xff] %v784_v17 }
 0x142   : > { %825 = vst [vmem:[#allocation2 + $0x118] sm:$0xff] %v785_v33  ;;  %826 = vst [vmem:[#allocation2 + $0x98] sm:$0xff] %v786_v49 }
 0x143   : > { %827 = vst [vmem:[#allocation2 + $0xf8] sm:$0xff] %v787_v16  ;;  %828 = vst [vmem:[#allocation2 + $0x38] sm:$0xff] %v788_v48 }
 0x144   : > { %829 = vst [vmem:[#allocation2 + $0x8] sm:$0xff] %v789_v36  ;;  %830 = vst [vmem:[#allocation2 + $0x78] sm:$0xff] %v790_v52 }
 0x145   : > { %831 = vst [vmem:[#allocation2 + $0x20] sm:$0xff] %v2484_v27  ;;  %832 = vst [vmem:[#allocation2 + $0xc8] sm:$0xff] %v2483_v3 }
 0x146   : > { %833 = vst [vmem:[#allocation2 + $0x90] sm:$0xff] %v2481_v59  ;;  %834 = vst [vmem:[#allocation2 + $0xa0] sm:$0xff] %v2485_v51  ;;  %v2492_v51 = vmax.f32 %v2121_v60, 0.0 }
 0x147   : > { %835 = vst [vmem:[#allocation2 + $0x70] sm:$0xff] %v2486_v11  ;;  %836 = vst [vmem:[#allocation2 + $0x58] sm:$0xff] %v2487_v35  ;;  %v2493_v11 = vmax.f32 %v2129_v12, 0.0  ;;  %v2494_v35 = vmax.f32 %v2137_v28, 0.0 }
 0x148   : > { %837 = vst [vmem:[#allocation2 + $0xe0] sm:$0xff] %v2488_v40  ;;  %838 = vst [vmem:[#allocation2 + $0x60] sm:$0xff] %v2489_v4  ;;  %v2495_v40 = vmax.f32 %v2145_v44, 0.0  ;;  %v2496_v4 = vmax.f32 %v2153_v5, 0.0 }
 0x149   : > { %839 = vst [vmem:[#allocation2 + $0xa8] sm:$0xff] %v2490_v61  ;;  %840 = vst [vmem:[#allocation2 + $0x88] sm:$0xff] %v2491_v53  ;;  %v2497_v61 = vmax.f32 %v2161_v37, 0.0  ;;  %v2498_v53 = vmax.f32 %v2169_v21, 0.0 }
 0x14a   : > { %841 = vst [vmem:[#allocation2 + $0xd8] sm:$0xff] %v2492_v51  ;;  %842 = vst [vmem:[#allocation2 + $0xc0] sm:$0xff] %v2493_v11  ;;  %v2499_v51 = vmax.f32 %v2177_v56, 0.0 }
 0x14b   : > { %843 = vst [vmem:[#allocation2 + $0x50] sm:$0xff] %v2494_v35  ;;  %844 = vst [vmem:[#allocation2 + $0xf0] sm:$0xff] %v2495_v40 }
 0x14c   : > { %845 = vst [vmem:[#allocation2 + $0xb8] sm:$0xff] %v2496_v4  ;;  %846 = vst [vmem:[#allocation2 + $0x28] sm:$0xff] %v2497_v61 }
 0x14d   : > { %847 = vst [vmem:[#allocation2 + $0x100] sm:$0xff] %v2498_v53  ;;  %848 = vst [vmem:[#allocation2] sm:$0xff] %v2499_v51 }
 0x14e   : > { %849 = vst [vmem:[#allocation2 + $0x40] sm:$0xff] %v2480_v45  ;;  %850 = vst [vmem:[#allocation2 + $0xe8] sm:$0xff] %v2482_v24 }
 0x14f PF: > { %p1610_p6 = scmp.le.s32.totalorder %s1892_s18, 0 }
 0x151   : > { %854 = sbr.rel (%p1610_p6) target bundleno = 363 (0x16b), region = 48 }
 0x156   : > { %v855_v11 = vld [vmem:[#allocation2 + $0xb0] sm:$0xff]  ;;  %v858_v51 = vld [vmem:[#allocation2 + $0x48] sm:$0xff]  ;;  %v865_v14 = vld [vmem:[#allocation2 + $0x118] sm:$0xff]  ;;  %v2500_v9 = vmax.f32 %v2182_v43, 0.0  ;;  %v2501_v25 = vmax.f32 %v2190_v19, 0.0  ;;  %v2503_v32 = vmax.f32 %v2065_v63, 0.0 }
 0x157   : > { %v856_v35 = vld [vmem:[#allocation2 + $0xd0] sm:$0xff]  ;;  %v891_v4 = vmax.f32 %v855_v11, %v775_v58  ;;  %v859_v45 = vld [vmem:[#allocation2 + $0x108] sm:$0xff]  ;;  %v894_v24 = vmax.f32 %v858_v51, %v778_v18  ;;  %v862_v58 = vld [vmem:[#allocation2 + $0x18] sm:$0xff]  ;;  %v901_v22 = vmax.f32 %v865_v14, %v785_v33  ;;  %v2505_v19 = vmax.f32 %v2081_v15, 0.0 }
 0x158   : > { %v857_v40 = vld [vmem:[#allocation2 + $0x10] sm:$0xff]  ;;  %v892_v61 = vmax.f32 %v856_v35, %v776_v2  ;;  %v860_v59 = vld [vmem:[#allocation2 + $0x68] sm:$0xff]  ;;  %v895_v3 = vmax.f32 %v859_v45, %v779_v26  ;;  %v863_v11 = vld [vmem:[#allocation2 + $0x80] sm:$0xff]  ;;  %v898_v2 = vmax.f32 %v862_v58, %v782_v50  ;;  %v2506_v35 = vmax.f32 %v2089_v23, 0.0 }
 0x159   : > { %v893_v53 = vmax.f32 %v857_v40, %v777_v10  ;;  %v896_v27 = vmax.f32 %v860_v59, %v780_v34  ;;  %v861_v54 = vld [vmem:[#allocation2 + $0x30] sm:$0xff]  ;;  %927 = vst [vmem:[#allocation2 + $0xb0] sm:$0xff] %v891_v4  ;;  %v899_v6 = vmax.f32 %v863_v11, %v783_v1  ;;  %v866_v18 = vld [vmem:[#allocation2 + $0x98] sm:$0xff]  ;;  %930 = vst [vmem:[#allocation2 + $0x48] sm:$0xff] %v894_v24  ;;  %v2510_v15 = vmax.f32 %v2121_v60, 0.0 }
 0x15a   : > { %928 = vst [vmem:[#allocation2 + $0xd0] sm:$0xff] %v892_v61  ;;  %v897_v62 = vmax.f32 %v861_v54, %v781_v42  ;;  %v864_v10 = vld [vmem:[#allocation2 + $0x110] sm:$0xff]  ;;  %931 = vst [vmem:[#allocation2 + $0x108] sm:$0xff] %v895_v3  ;;  %v902_v26 = vmax.f32 %v866_v18, %v786_v49  ;;  %v867_v30 = vld [vmem:[#allocation2 + $0xf8] sm:$0xff]  ;;  %v2509_v54 = vmax.f32 %v2113_v47, 0.0  ;;  %v2514_v60 = vmax.f32 %v2153_v5, 0.0 }
 0x15b   : > { %929 = vst [vmem:[#allocation2 + $0x10] sm:$0xff] %v893_v53  ;;  %932 = vst [vmem:[#allocation2 + $0x68] sm:$0xff] %v896_v27  ;;  %v900_v59 = vmax.f32 %v864_v10, %v784_v17  ;;  %v868_v34 = vld [vmem:[#allocation2 + $0x38] sm:$0xff]  ;;  %v869_v38 = vld [vmem:[#allocation2 + $0x8] sm:$0xff]  ;;  %v903_v42 = vmax.f32 %v867_v30, %v787_v16  ;;  %v2512_v10 = vmax.f32 %v2137_v28, 0.0  ;;  %v2515_v30 = vmax.f32 %v2161_v37, 0.0 }
 0x15c   : > { %933 = vst [vmem:[#allocation2 + $0x30] sm:$0xff] %v897_v62  ;;  %934 = vst [vmem:[#allocation2 + $0x18] sm:$0xff] %v898_v2  ;;  %v904_v3 = vmax.f32 %v868_v34, %v788_v48  ;;  %v905_v27 = vmax.f32 %v869_v38, %v789_v36  ;;  %v870_v46 = vld [vmem:[#allocation2 + $0x78] sm:$0xff]  ;;  %v871_v50 = vld [vmem:[#allocation2 + $0x20] sm:$0xff]  ;;  %v2502_v36 = vmax.f32 %v2057_v55, 0.0  ;;  %v2507_v55 = vmax.f32 %v2097_v31, 0.0 }
 0x15d   : > { %935 = vst [vmem:[#allocation2 + $0x80] sm:$0xff] %v899_v6  ;;  %v872_v57 = vld [vmem:[#allocation2 + $0xc8] sm:$0xff]  ;;  %936 = vst [vmem:[#allocation2 + $0x110] sm:$0xff] %v900_v59  ;;  %v906_v1 = vmax.f32 %v870_v46, %v790_v52  ;;  %v907_v17 = vmax.f32 %v871_v50, %v2500_v9  ;;  %v873_v41 = vld [vmem:[#allocation2 + $0x90] sm:$0xff]  ;;  %v2504_v52 = vmax.f32 %v2073_v7, 0.0  ;;  %v2508_v7 = vmax.f32 %v2105_v39, 0.0 }
 0x15e   : > { %937 = vst [vmem:[#allocation2 + $0x118] sm:$0xff] %v901_v22  ;;  %938 = vst [vmem:[#allocation2 + $0x98] sm:$0xff] %v902_v26  ;;  %v908_v33 = vmax.f32 %v872_v57, %v2501_v25  ;;  %v874_v49 = vld [vmem:[#allocation2 + $0xa0] sm:$0xff]  ;;  %v875_v0 = vld [vmem:[#allocation2 + $0x70] sm:$0xff]  ;;  %v909_v16 = vmax.f32 %v873_v41, %v2502_v36  ;;  %v2511_v31 = vmax.f32 %v2129_v12, 0.0  ;;  %v2513_v39 = vmax.f32 %v2145_v44, 0.0 }
 0x15f   : > { %939 = vst [vmem:[#allocation2 + $0xf8] sm:$0xff] %v903_v42  ;;  %940 = vst [vmem:[#allocation2 + $0x38] sm:$0xff] %v904_v3  ;;  %v910_v48 = vmax.f32 %v874_v49, %v2503_v32  ;;  %v911_v20 = vmax.f32 %v875_v0, %v2504_v52  ;;  %v876_v43 = vld [vmem:[#allocation2 + $0x58] sm:$0xff]  ;;  %v877_v13 = vld [vmem:[#allocation2 + $0xe0] sm:$0xff]  ;;  %v2516_v12 = vmax.f32 %v2169_v21, 0.0  ;;  %v2517_v44 = vmax.f32 %v2177_v56, 0.0 }
 0x160   : > { %941 = vst [vmem:[#allocation2 + $0x8] sm:$0xff] %v905_v27  ;;  %v878_v45 = vld [vmem:[#allocation2 + $0x60] sm:$0xff]  ;;  %942 = vst [vmem:[#allocation2 + $0x78] sm:$0xff] %v906_v1  ;;  %v912_v24 = vmax.f32 %v876_v43, %v2505_v19  ;;  %v913_v40 = vmax.f32 %v877_v13, %v2506_v35  ;;  %v879_v63 = vld [vmem:[#allocation2 + $0xa8] sm:$0xff]  ;;  %v2518_v46 = vmax.f32 %v2185_v29, 0.0  ;;  %v2519_v5 = vmax.f32 %v2193_v8, 0.0 }
 0x161   : > { %943 = vst [vmem:[#allocation2 + $0x20] sm:$0xff] %v907_v17  ;;  %944 = vst [vmem:[#allocation2 + $0xc8] sm:$0xff] %v908_v33  ;;  %v914_v4 = vmax.f32 %v878_v45, %v2507_v55  ;;  %v880_v61 = vld [vmem:[#allocation2 + $0x88] sm:$0xff]  ;;  %v881_v53 = vld [vmem:[#allocation2 + $0xd8] sm:$0xff]  ;;  %v915_v51 = vmax.f32 %v879_v63, %v2508_v7 }
 0x162   : > { %945 = vst [vmem:[#allocation2 + $0x90] sm:$0xff] %v909_v16  ;;  %946 = vst [vmem:[#allocation2 + $0xa0] sm:$0xff] %v910_v48  ;;  %v916_v58 = vmax.f32 %v880_v61, %v2509_v54  ;;  %v917_v11 = vmax.f32 %v881_v53, %v2510_v15  ;;  %v882_v23 = vld [vmem:[#allocation2 + $0xc0] sm:$0xff]  ;;  %v883_v62 = vld [vmem:[#allocation2 + $0x50] sm:$0xff] }
 0x163   : > { %947 = vst [vmem:[#allocation2 + $0x70] sm:$0xff] %v911_v20  ;;  %v884_v2 = vld [vmem:[#allocation2 + $0xf0] sm:$0xff]  ;;  %948 = vst [vmem:[#allocation2 + $0x58] sm:$0xff] %v912_v24  ;;  %v918_v6 = vmax.f32 %v882_v23, %v2511_v31  ;;  %v919_v14 = vmax.f32 %v883_v62, %v2512_v10  ;;  %v885_v47 = vld [vmem:[#allocation2 + $0xb8] sm:$0xff] }
 0x164   : > { %949 = vst [vmem:[#allocation2 + $0xe0] sm:$0xff] %v913_v40  ;;  %950 = vst [vmem:[#allocation2 + $0x60] sm:$0xff] %v914_v4  ;;  %v920_v18 = vmax.f32 %v884_v2, %v2513_v39  ;;  %v886_v59 = vld [vmem:[#allocation2 + $0x28] sm:$0xff]  ;;  %v887_v22 = vld [vmem:[#allocation2 + $0x100] sm:$0xff]  ;;  %v921_v26 = vmax.f32 %v885_v47, %v2514_v60 }
 0x165   : > { %951 = vst [vmem:[#allocation2 + $0xa8] sm:$0xff] %v915_v51  ;;  %952 = vst [vmem:[#allocation2 + $0x88] sm:$0xff] %v916_v58  ;;  %v922_v34 = vmax.f32 %v886_v59, %v2515_v30  ;;  %v923_v38 = vmax.f32 %v887_v22, %v2516_v12  ;;  %v888_v28 = vld [vmem:[#allocation2] sm:$0xff]  ;;  %v890_v3 = vld [vmem:[#allocation2 + $0xe8] sm:$0xff] }
 0x166   : > { %953 = vst [vmem:[#allocation2 + $0xd8] sm:$0xff] %v917_v11  ;;  %v889_v42 = vld [vmem:[#allocation2 + $0x40] sm:$0xff]  ;;  %954 = vst [vmem:[#allocation2 + $0xc0] sm:$0xff] %v918_v6  ;;  %v924_v27 = vmax.f32 %v888_v28, %v2517_v44  ;;  %v926_v57 = vmax.f32 %v890_v3, %v2519_v5 }
 0x167   : > { %955 = vst [vmem:[#allocation2 + $0x50] sm:$0xff] %v919_v14  ;;  %956 = vst [vmem:[#allocation2 + $0xf0] sm:$0xff] %v920_v18  ;;  %v925_v50 = vmax.f32 %v889_v42, %v2518_v46 }
 0x168   : > { %957 = vst [vmem:[#allocation2 + $0xb8] sm:$0xff] %v921_v26  ;;  %958 = vst [vmem:[#allocation2 + $0x28] sm:$0xff] %v922_v34 }
 0x169   : > { %959 = vst [vmem:[#allocation2 + $0x100] sm:$0xff] %v923_v38  ;;  %960 = vst [vmem:[#allocation2] sm:$0xff] %v924_v27 }
 0x16a   : > { %961 = vst [vmem:[#allocation2 + $0x40] sm:$0xff] %v925_v50  ;;  %962 = vst [vmem:[#allocation2 + $0xe8] sm:$0xff] %v926_v57 }
 0x16b PF: > { %p1611_p7 = scmp.ne.s32.totalorder %s1892_s18, 8 }
 0x16d   : > { %966 = sbr.rel (%p1611_p7) target bundleno = 896 (0x380), region = 52 }
 0x172   : > { %v1870_v21 = vld [vmem:[%s2477_s3 + $0x38] sm:$0xff]   ;;  %v1871_v37 = vld [vmem:[%s2477_s3 + $0x30] sm:$0xff]   ;;  %v1872_v56 = vld [vmem:[%s2477_s3 + $0x28] sm:$0xff]   ;;  %v1305_v5 = vlaneseq  ;;  %vm1906_vm12 = vmmov 0   ;;  %vm1326_vm13 = vcmask 261120  }
 0x173   : > { %1693 = vmatprep.subr.bf16.mxu0 %v1870_v21  ;;  %v1873_v29 = vld [vmem:[%s2477_s3 + $0x20] sm:$0xff]   ;;  %v967_v8 = vld [vmem:[#allocation2 + $0xb0] sm:$0xff]  ;;  %v1874_v17 = vld [vmem:[%s2477_s3 + $0x18] sm:$0xff]  }
 0x174   : > { %1694 = vmatpush3.bf16.msra.mxu0 %v1870_v21  ;;  %v968_v1 = vld [vmem:[#allocation2 + $0xd0] sm:$0xff]  ;;  %v1876_v33 = vld [vmem:[%s2477_s3 + $0x8] sm:$0xff]   ;;  %v1877_v41 = vld [vmem:[%s2477_s3] sm:$0xff]   ;;  %v1310_v57 = vshrl.u32 %v1305_v5, 7  ;;  %v1306_v21 = vand.u32 127, %v1305_v5 }
 0x175   : > { %1695 = vmatprep.subr.bf16.mxu0 %v1871_v37  ;;  %v1003_v9 = vpack.c.bf16 %v968_v1, %v967_v8  ;;  %v1875_v25 = vld [vmem:[%s2477_s3 + $0x10] sm:$0xff]   ;;  %v970_v0 = vld [vmem:[#allocation2 + $0x48] sm:$0xff]  ;;  %v974_v20 = vld [vmem:[#allocation2 + $0x18] sm:$0xff]  ;;  %v1904_v1 = vmov 0.027777778  }
 0x176   : > { %v969_v49 = vld [vmem:[#allocation2 + $0x10] sm:$0xff]  ;;  %v971_v36 = vld [vmem:[#allocation2 + $0x108] sm:$0xff]  ;;  %v975_v43 = vld [vmem:[#allocation2 + $0x80] sm:$0xff] }
 0x177   : > { %1709 = vmatprep.mubr.bf16.mxu0 %v1003_v9  ;;  %v972_v16 = vld [vmem:[#allocation2 + $0x68] sm:$0xff]  ;;  %v1004_v32 = vpack.c.bf16 %v970_v0, %v969_v49  ;;  %v973_v52 = vld [vmem:[#allocation2 + $0x30] sm:$0xff]  ;;  %v977_v24 = vld [vmem:[#allocation2 + $0x118] sm:$0xff] }
 0x178   : > { %1696 = vmatpush3.bf16.msra.mxu0 %v1871_v37  ;;  %v1005_v48 = vpack.c.bf16 %v972_v16, %v971_v36  ;;  %v976_v13 = vld [vmem:[#allocation2 + $0x110] sm:$0xff]  ;;  %v1006_v45 = vpack.c.bf16 %v974_v20, %v973_v52  ;;  %v978_v35 = vld [vmem:[#allocation2 + $0x98] sm:$0xff]  ;;  %v981_v61 = vld [vmem:[#allocation2 + $0x8] sm:$0xff]  ;;  %v1315_v37 = vadd.s32 1, %v1310_v57 }
 0x179   : > { %1697 = vmatprep.subr.bf16.mxu0 %v1872_v56  ;;  %v1007_v19 = vpack.c.bf16 %v976_v13, %v975_v43  ;;  %v979_v40 = vld [vmem:[#allocation2 + $0xf8] sm:$0xff]  ;;  %v1008_v4 = vpack.c.bf16 %v978_v35, %v977_v24  ;;  %v983_v7 = vld [vmem:[#allocation2 + $0x20] sm:$0xff]  ;;  %v984_v51 = vld [vmem:[#allocation2 + $0xc8] sm:$0xff] }
 0x17a   : > { %v980_v55 = vld [vmem:[#allocation2 + $0x38] sm:$0xff]  ;;  %v1011_v58 = vpack.c.bf16 %v984_v51, %v983_v7  ;;  %v985_v15 = vld [vmem:[#allocation2 + $0x90] sm:$0xff]  ;;  %v986_v11 = vld [vmem:[#allocation2 + $0xa0] sm:$0xff]  ;;  %v1316_v8 = vmul.u32 36, %v1315_v37 }
 0x17b   : > { %v1009_v63 = vpack.c.bf16 %v980_v55, %v979_v40  ;;  %v982_v53 = vld [vmem:[#allocation2 + $0x78] sm:$0xff]  ;;  %v987_v23 = vld [vmem:[#allocation2 + $0x70] sm:$0xff]  ;;  %v1012_v2 = vpack.c.bf16 %v986_v11, %v985_v15  ;;  %v989_v6 = vld [vmem:[#allocation2 + $0xe0] sm:$0xff] }
 0x17c   : > { %1698 = vmatpush3.bf16.msra.mxu0 %v1872_v56  ;;  %v1010_v54 = vpack.c.bf16 %v982_v53, %v981_v61  ;;  %v988_v62 = vld [vmem:[#allocation2 + $0x58] sm:$0xff]  ;;  %v990_v10 = vld [vmem:[#allocation2 + $0x60] sm:$0xff]  ;;  %v991_v14 = vld [vmem:[#allocation2 + $0xa8] sm:$0xff]  ;;  %v1307_v56 = vadd.s32 128, %v1306_v21  ;;  %vm1317_vm7 = vcmp.lt.s32.totalorder %v1306_v21, %v1316_v8 }
 0x17d   : > { %1699 = vmatprep.subr.bf16.mxu0 %v1873_v29  ;;  %v1013_v31 = vpack.c.bf16 %v988_v62, %v987_v23  ;;  %v992_v39 = vld [vmem:[#allocation2 + $0x88] sm:$0xff]  ;;  %v1014_v18 = vpack.c.bf16 %v990_v10, %v989_v6  ;;  %v993_v59 = vld [vmem:[#allocation2 + $0xd8] sm:$0xff]  ;;  %v994_v22 = vld [vmem:[#allocation2 + $0xc0] sm:$0xff] }
 0x17e   : > { %v1015_v47 = vpack.c.bf16 %v992_v39, %v991_v14  ;;  %v995_v60 = vld [vmem:[#allocation2 + $0x50] sm:$0xff]  ;;  %v1016_v30 = vpack.c.bf16 %v994_v22, %v993_v59  ;;  %v997_v12 = vld [vmem:[#allocation2 + $0xb8] sm:$0xff]  ;;  %v998_v38 = vld [vmem:[#allocation2 + $0x28] sm:$0xff]  ;;  %vm1318_vm4 = vcmp.lt.s32.totalorder %v1307_v56, %v1316_v8 }
 0x17f   : > { %v996_v26 = vld [vmem:[#allocation2 + $0xf0] sm:$0xff]  ;;  %v999_v28 = vld [vmem:[#allocation2 + $0x100] sm:$0xff]  ;;  %v1018_v3 = vpack.c.bf16 %v998_v38, %v997_v12  ;;  %v1002_v46 = vld [vmem:[#allocation2 + $0xe8] sm:$0xff] }
 0x180   : > { %1700 = vmatpush3.bf16.msra.mxu0 %v1873_v29  ;;  %v1017_v34 = vpack.c.bf16 %v996_v26, %v995_v60  ;;  %v1000_v42 = vld [vmem:[#allocation2] sm:$0xff]  ;;  %v1311_v29 = vmul.u32 36, %v1310_v57 }
 0x181   : > { %1701 = vmatprep.subr.bf16.mxu0 %v1874_v17  ;;  %v1019_v44 = vpack.c.bf16 %v1000_v42, %v999_v28  ;;  %v1001_v27 = vld [vmem:[#allocation2 + $0x40] sm:$0xff] }
 0x182   : > { %v1020_v50 = vpack.c.bf16 %v1002_v46, %v1001_v27  ;;  %vm1313_vm3 = vcmp.ge.s32.totalorder %v1307_v56, %v1311_v29  ;;  %vm1312_vm6 = vcmp.ge.s32.totalorder %v1306_v21, %v1311_v29 }
 0x183   : > { %vm1321_vm5 = vmand %vm1313_vm3, %vm1318_vm4 }
 0x184   : > { %1702 = vmatpush3.bf16.msra.mxu0 %v1874_v17  ;;  %1621 = vmatprep.mubr.msk.f32.mxu1 %vm1321_vm5, %v1904_v1  ;;  %vm2369_vm8 = vmand %vm1312_vm6, %vm1317_vm7  ;;  %v1308_v17 = vadd.s32 256, %v1306_v21 }
 0x185   : > { %1703 = vmatprep.subr.bf16.mxu0 %v1875_v25 }
 0x186   : > { %vm1314_vm9 = vcmp.ge.s32.totalorder %v1308_v17, %v1311_v29  ;;  %vm1319_vm10 = vcmp.lt.s32.totalorder %v1308_v17, %v1316_v8 }
 0x187   : > { %vm2373_vm11 = vmand %vm1314_vm9, %vm1319_vm10 }
 0x188   : > { %1704 = vmatpush3.bf16.msra.mxu0 %v1875_v25 }
 0x189   : > { %1705 = vmatprep.subr.bf16.mxu0 %v1876_v33 }
 0x18c   : > { %1706 = vmatpush3.bf16.msra.mxu0 %v1876_v33 }
 0x18d   : > { %1707 = vmatprep.subr.bf16.mxu0 %v1877_v41 }
 0x190   : > { %1708 = vmatpush3.bf16.msra.mxu0 %v1877_v41 }
 0x193   : > { %1710 = vmatmul.mubr.bf16.vlgmr.msra.gmra.mxu0 %v1004_v32 }
 0x194   : > { %1713 = vmatprep.mubr.bf16.mxu0 %v1005_v48 }
 0x19b   : > { %1714 = vmatmul.mubr.bf16.gmra.mxu0 %v1006_v45 }
 0x19c   : > { %1717 = vmatprep.mubr.bf16.mxu0 %v1007_v19 }
 0x1a3   : > { %1718 = vmatmul.mubr.bf16.gmra.mxu0 %v1008_v4 }
 0x1a4   : > { %1721 = vmatprep.mubr.bf16.mxu0 %v1009_v63 }
 0x1ab   : > { %1722 = vmatmul.mubr.bf16.gmra.mxu0 %v1010_v54 }
 0x1ac   : > { %1725 = vmatprep.mubr.bf16.mxu0 %v1011_v58 }
 0x1b3   : > { %1726 = vmatmul.mubr.bf16.gmra.mxu0 %v1012_v2  ;;  %v2406_v2 = vld [vmem:[%s2478_s4] ss:$0 sm:$0xff] }
 0x1b4   : > { %1729 = vmatprep.mubr.bf16.mxu0 %v1013_v31 }
 0x1bb   : > { %1730 = vmatmul.mubr.bf16.gmra.mxu0 %v1014_v18 }
 0x1bc   : > { %1733 = vmatprep.mubr.bf16.mxu0 %v1015_v47 }
 0x1c3   : > { %1734 = vmatmul.mubr.bf16.gmra.mxu0 %v1016_v30 }
 0x1c4   : > { %1737 = vmatprep.mubr.bf16.mxu0 %v1017_v34 }
 0x1cb   : > { %1738 = vmatmul.mubr.bf16.gmra.mxu0 %v1018_v3 }
 0x1cc   : > { %1741 = vmatprep.mubr.bf16.mxu0 %v1019_v44 }
 0x1d3   : > { %1742 = vmatmul.mubr.bf16.gmra.mxu0 %v1020_v50 }
 0x253   : > { %v2377_v33 = vpop.f32.mrf.mxu0 }
 0x255   : > { %v2379_v41 = vpop.f32.mrf.mxu0 }
 0x257   : > { %v2381_v49 = vpop.f32.mrf.mxu0 }
 0x259   : > { %v2383_v0 = vpop.f32.mrf.mxu0 }
 0x25b   : > { %v2385_v36 = vpop.f32.mrf.mxu0 }
 0x25d   : > { %v2387_v16 = vpop.f32.mrf.mxu0 }
 0x25f   : > { %v2389_v32 = vpop.f32.mrf.mxu0 }
 0x261   : > { %v2391_v48 = vpop.f32.mrf.mxu0 }
 0x263   : > { %v1719_v52 = vpop.f32.mrf.mxu0 }
 0x264   : > { %v1167_v46 = vadd.f32 %v1719_v52, %v2406_v2 }
 0x265   : > { %v1158_v20 = vpop.f32.mrf.mxu0 }
 0x266   : > { %v1279_v8 = vmax.f32 %v1167_v46, 0.0  ;;  %v1159_v17 = vadd.f32 %v2406_v2, %v1158_v20 }
 0x267   : > { %v1720_v43 = vpop.f32.mrf.mxu0 }
 0x268   : > { %v1170_v42 = vadd.f32 %v1720_v43, %v2406_v2 }
 0x269   : > { %v1161_v13 = vpop.f32.mrf.mxu0 }
 0x26a   : > { %v1280_v21 = vmax.f32 %v1170_v42, 0.0  ;;  %v1162_v37 = vadd.f32 %v2406_v2, %v1161_v13 }
 0x26b   : > { %v1723_v45 = vpop.f32.mrf.mxu0 }
 0x26c   : > { %v1183_v39 = vadd.f32 %v1723_v45, %v2406_v2  ;;  %v1154_v45 = vadd.f32 %v2389_v32, %v2406_v2 }
 0x26d   : > { %v1174_v19 = vpop.f32.mrf.mxu0 }
 0x26e   : > { %v1283_v34 = vmax.f32 %v1183_v39, 0.0  ;;  %v1175_v12 = vadd.f32 %v2406_v2, %v1174_v19  ;;  %v1278_v19 = vmax.f32 %v1162_v37, 0.0 }
 0x26f   : > { %v1724_v24 = vpop.f32.mrf.mxu0 }
 0x270   : > { %v1186_v31 = vadd.f32 %v1724_v24, %v2406_v2  ;;  %v1281_v50 = vmax.f32 %v1175_v12, 0.0 }
 0x271   : > { %v1177_v35 = vpop.f32.mrf.mxu0 }
 0x272   : > { %v1284_v22 = vmax.f32 %v1186_v31, 0.0  ;;  %v1178_v60 = vadd.f32 %v2406_v2, %v1177_v35  ;;  %v1151_v35 = vadd.f32 %v2385_v36, %v2406_v2  ;;  %v1143_v36 = vadd.f32 %v2406_v2, %v2387_v16 }
 0x273   : > { %v2393_v40 = vpop.f32.mrf.mxu0  ;;  %v1135_v16 = vadd.f32 %v2377_v33, %v2406_v2  ;;  %v1127_v33 = vadd.f32 %v2406_v2, %v2379_v41  ;;  %v1905_v41 = vmov 0.0  }
 0x274   : > { %v1282_v3 = vmax.f32 %v1178_v60, 0.0 }
 0x275   : > { %v2395_v55 = vpop.f32.mrf.mxu0 }
 0x277   : > { %v2397_v4 = vpop.f32.mrf.mxu0 }
 0x279   : > { %v2399_v63 = vpop.f32.mrf.mxu0 }
 0x27b   : > { %v1731_v61 = vpop.f32.mrf.mxu0 }
 0x27c   : > { %v1215_v13 = vadd.f32 %v1731_v61, %v2406_v2 }
 0x27d   : > { %v2401_v53 = vpop.f32.mrf.mxu0 }
 0x27e   : > { %v1291_v32 = vmax.f32 %v1215_v13, 0.0  ;;  %v1207_v61 = vadd.f32 %v2406_v2, %v2401_v53  ;;  %v1199_v53 = vadd.f32 %v2393_v40, %v2406_v2  ;;  %v1191_v40 = vadd.f32 %v2406_v2, %v2395_v55 }
 0x27f   : > { %v1732_v7 = vpop.f32.mrf.mxu0 }
 0x280   : > { %v1218_v52 = vadd.f32 %v1732_v7, %v2406_v2  ;;  %v1276_v7 = vmax.f32 %v1154_v45, 0.0 }
 0x281   : > { %v1209_v51 = vpop.f32.mrf.mxu0 }
 0x282   : > { %v1292_v20 = vmax.f32 %v1218_v52, 0.0 }
 0x283   : > { %v1735_v54 = vpop.f32.mrf.mxu0 }
 0x284   : > { %v1231_v44 = vadd.f32 %v1735_v54, %v2406_v2  ;;  %v1277_v54 = vmax.f32 %v1159_v17, 0.0 }
 0x285   : > { %v1222_v58 = vpop.f32.mrf.mxu0 }
 0x286   : > { %v1295_v56 = vmax.f32 %v1231_v44, 0.0  ;;  %v1223_v29 = vadd.f32 %v2406_v2, %v1222_v58  ;;  %v1210_v58 = vadd.f32 %v2406_v2, %v1209_v51  ;;  %v1202_v51 = vadd.f32 %v2397_v4, %v2406_v2 }
 0x287   : > { %v1736_v15 = vpop.f32.mrf.mxu0  ;;  %v1194_v4 = vadd.f32 %v2406_v2, %v2399_v63 }
 0x288   : > { %v1234_v38 = vadd.f32 %v1736_v15, %v2406_v2  ;;  %v1293_v24 = vmax.f32 %v1223_v29, 0.0  ;;  %v1146_v15 = vadd.f32 %v2406_v2, %v2391_v48  ;;  %v1138_v48 = vadd.f32 %v2381_v49, %v2406_v2 }
 0x289   : > { %v1225_v11 = vpop.f32.mrf.mxu0  ;;  %v1288_v39 = vmax.f32 %v1202_v51, 0.0  ;;  %v1130_v49 = vadd.f32 %v2406_v2, %v2383_v0  ;;  %v1286_v60 = vmax.f32 %v1194_v4, 0.0 }
 0x28a   : > { %v1296_v5 = vmax.f32 %v1234_v38, 0.0  ;;  %v1226_v57 = vadd.f32 %v2406_v2, %v1225_v11  ;;  %v1274_v31 = vmax.f32 %v1146_v15, 0.0 }
 0x28b   : > { %v1739_v23 = vpop.f32.mrf.mxu0  ;;  %v1270_v63 = vmax.f32 %v1130_v49, 0.0 }
 0x28c   : > { %v1247_v10 = vadd.f32 %v1739_v23, %v2406_v2  ;;  %v1294_v43 = vmax.f32 %v1226_v57, 0.0  ;;  %v1275_v23 = vmax.f32 %v1151_v35, 0.0 }
 0x28d   : > { %v1238_v62 = vpop.f32.mrf.mxu0 }
 0x28e   : > { %v1299_v26 = vmax.f32 %v1247_v10, 0.0  ;;  %v1239_v30 = vadd.f32 %v2406_v2, %v1238_v62  ;;  %v1290_v62 = vmax.f32 %v1210_v58, 0.0 }
 0x28f   : > { %v1740_v6 = vpop.f32.mrf.mxu0 }
 0x290   : > { %v1250_v14 = vadd.f32 %v1740_v6, %v2406_v2  ;;  %v1297_v27 = vmax.f32 %v1239_v30, 0.0  ;;  %v1289_v6 = vmax.f32 %v1207_v61, 0.0  ;;  %v1285_v30 = vmax.f32 %v1191_v40, 0.0 }
 0x291   : > { %v1241_v18 = vpop.f32.mrf.mxu0 }
 0x292   : > { %v1242_v47 = vadd.f32 %v2406_v2, %v1241_v18  ;;  %v1300_v59 = vmax.f32 %v1250_v14, 0.0  ;;  %v1273_v14 = vmax.f32 %v1143_v36, 0.0  ;;  %v1272_v18 = vmax.f32 %v1138_v48, 0.0 }
 0x293   : > { %v1743_v11 = vpop.f32.mrf.mxu0 }
 0x294   : > { %1653 = vmatprep.subr.mxu1 %v1300_v59  ;;  %v1298_v28 = vmax.f32 %v1242_v47, 0.0  ;;  %v1287_v47 = vmax.f32 %v1199_v53, 0.0  ;;  %v1263_v12 = vadd.f32 %v1743_v11, %v2406_v2 }
 0x295   : > { %1654 = vmatpush3.msra.mxu1 %v1284_v22  ;;  %v1254_v10 = vpop.f32.mrf.mxu0  ;;  %v1271_v22 = vmax.f32 %v1135_v16, 0.0 }
 0x296   : > { %1655 = vmatprep.subr.mxu1 %v1299_v26  ;;  %v1255_v42 = vadd.f32 %v2406_v2, %v1254_v10 }
 0x297   : > { %1656 = vmatpush3.msra.mxu1 %v1283_v34  ;;  %v1744_v59 = vpop.f32.mrf.mxu0  ;;  %v1269_v34 = vmax.f32 %v1127_v33, 0.0 }
 0x298   : > { %1657 = vmatprep.subr.mxu1 %v1298_v28  ;;  %v1266_v26 = vadd.f32 %v1744_v59, %v2406_v2  ;;  %v1303_v28 = vmax.f32 %v1263_v12, 0.0  ;;  %v1301_v44 = vmax.f32 %v1255_v42, 0.0 }
 0x299   : > { %1658 = vmatpush3.msra.mxu1 %v1282_v3  ;;  %v1257_v0 = vpop.f32.mrf.mxu0 }
 0x29a   : > { %1659 = vmatprep.subr.mxu1 %v1297_v27  ;;  %v1304_v55 = vmax.f32 %v1266_v26, 0.0  ;;  %v1258_v38 = vadd.f32 %v2406_v2, %v1257_v0  ;;  %v1325_v27 = vsel %vm2373_vm11, 0.027777778, %v1905_v41 }
 0x29b   : > { %1660 = vmatpush3.msra.mxu1 %v1281_v50 }
 0x29c   : > { %1661 = vmatprep.subr.mxu1 %v1296_v5  ;;  %v1302_v3 = vmax.f32 %v1258_v38, 0.0 }
 0x29d   : > { %1662 = vmatpush3.msra.mxu1 %v1280_v21 }
 0x29e   : > { %1663 = vmatprep.subr.mxu1 %v1295_v56 }
 0x29f   : > { %1664 = vmatpush3.msra.mxu1 %v1279_v8 }
 0x2a0   : > { %1665 = vmatprep.subr.mxu1 %v1294_v43 }
 0x2a1   : > { %1666 = vmatpush3.msra.mxu1 %v1278_v19 }
 0x2a2   : > { %1667 = vmatprep.subr.mxu1 %v1293_v24 }
 0x2a3   : > { %1668 = vmatpush3.msra.mxu1 %v1277_v54 }
 0x2a4   : > { %1669 = vmatprep.subr.mxu1 %v1292_v20 }
 0x2a5   : > { %1670 = vmatpush3.msra.mxu1 %v1276_v7 }
 0x2a6   : > { %1671 = vmatprep.subr.mxu1 %v1291_v32 }
 0x2a7   : > { %1672 = vmatpush3.msra.mxu1 %v1275_v23 }
 0x2a8   : > { %1673 = vmatprep.subr.mxu1 %v1290_v62 }
 0x2a9   : > { %1674 = vmatpush3.msra.mxu1 %v1274_v31 }
 0x2aa   : > { %1675 = vmatprep.subr.mxu1 %v1289_v6 }
 0x2ab   : > { %1676 = vmatpush3.msra.mxu1 %v1273_v14 }
 0x2ac   : > { %1677 = vmatprep.subr.mxu1 %v1288_v39 }
 0x2ad   : > { %1678 = vmatpush3.msra.mxu1 %v1272_v18 }
 0x2ae   : > { %1679 = vmatprep.subr.mxu1 %v1287_v47 }
 0x2af   : > { %1680 = vmatpush3.msra.mxu1 %v1271_v22 }
 0x2b0   : > { %1681 = vmatprep.subr.mxu1 %v1286_v60 }
 0x2b1   : > { %1682 = vmatpush3.msra.mxu1 %v1270_v63 }
 0x2b2   : > { %1683 = vmatprep.subr.mxu1 %v1285_v30 }
 0x2b3   : > { %1684 = vmatpush3.msra.mxu1 %v1269_v34 }
 0x2b4   : > { %1622 = vmatmul.mubr.msk.f32.vlgmr.msra.gmra.mxu1 %vm2369_vm8, %v1904_v1  ;;  %1745 = vmatprep.subr.mxu1 %v1905_v41 }
 0x2b5   : > { %1746 = vmatpush3.msra.mxu1 %v1304_v55  ;;  %1753 = vmatprep.mubr.msk.f32.mxu1 %vm1906_vm12, %v1905_v41 }
 0x2b6   : > { %1747 = vmatprep.subr.mxu1 %v1905_v41 }
 0x2b7   : > { %1748 = vmatpush3.msra.mxu1 %v1303_v28 }
 0x2b8   : > { %1749 = vmatprep.subr.mxu1 %v1905_v41 }
 0x2b9   : > { %1750 = vmatpush3.msra.mxu1 %v1302_v3 }
 0x2ba   : > { %1751 = vmatprep.subr.mxu1 %v1905_v41 }
 0x2bb   : > { %1752 = vmatpush3.msra.mxu1 %v1301_v44 }
 0x2bc   : > { %1754 = vmatmul.mubr.msk.f32.vlgmr.msra.gmra.mxu1 %vm1326_vm13, %v1325_v27 }
 0x374   : > { %v1685_v1 = vpop.f32.mrf.mxu1 }
 0x376   : > { %v1686_v9 = vpop.f32.mrf.mxu1 }
 0x377   : > { %v1687_v46 = vadd.f32 %v1686_v9, %v1685_v1 }
 0x37c   : > { %v1466_v2 = vpop.f32.mrf.mxu1 }
 0x37d   : > { %v1467_v50 = vadd.f32 %v1687_v46, %v1466_v2 }
 0x37e   : > { %v1755_v5 = vpop.f32.mrf.mxu1 }
 0x37f   : > { %1470 = vst [vmem:[%s2479_s5] sm:$0xff] %v1467_v50 }
 0x380 PF: > { %s15_s20 = sadd.s32 1, %s1900_s20   ;;  %s2524_s18 = smov %s1896_s19 }
 0x381   : > { %p12_p8 = scmp.ge.s32.totalorder %s15_s20, 11   ;;  %s2525_s19 = smov %s2527_s21 }
 0x383   :  { %14 = sbr.rel (!%p12_p8) target bundleno = 2 (0x2), region = 82 }

</bundles_post_ra>
